<compile_context>
chip_gen: v7x
topology: tpu7x:2x2x1
jax: 0.10.0
libtpu: 0.0.40
codegen_flags: <defaults>
</compile_context>

<pallas_src>
import functools

import jax
import jax.numpy as jnp
from jax.experimental import pallas as pl
from jax.experimental.pallas import tpu as pltpu


# Tiled-path parameters (only used for inputs larger than the threshold).
_LANES = 4096                       # lane-dense last dim, multiple of 128
_BLOCK_ROWS = 128                   # 128 x 4096 f32 = 2 MiB per tile
_TILED_THRESHOLD_BYTES = 2 * 1024 * 1024


def relu_kernel(x_ref, o_ref):
    # Elementwise ReLU on the VPU over the VMEM-resident block.  Weak-typed
    # 0.0 literal does not upcast; NaN propagation matches torch.relu.
    o_ref[...] = jnp.maximum(x_ref[...], 0.0)


def _cost(total_elems, itemsize):
    return pl.CostEstimate(
        flops=total_elems,
        bytes_accessed=2 * total_elems * itemsize,
        transcendentals=0,
    )


def _relu_small(x2d):
    # Single full-array VMEM block: no grid, no pipelining -- the whole
    # activation fits comfortably in VMEM, so tiling is pure overhead.
    total = x2d.shape[0] * x2d.shape[1]
    return pl.pallas_call(
        relu_kernel,
        out_shape=jax.ShapeDtypeStruct(x2d.shape, x2d.dtype),
        in_specs=[pl.BlockSpec(memory_space=pltpu.MemorySpace.VMEM)],
        out_specs=pl.BlockSpec(memory_space=pltpu.MemorySpace.VMEM),
        # In-place ReLU: output buffer aliases the input buffer.
        input_output_aliases={0: 0},
        cost_estimate=_cost(total, x2d.dtype.itemsize),
    )(x2d)


def _relu_tiled(x2d):
    # Large-activation path: 1-D grid over the sublane dim, marked "parallel"
    # so it can shard across v7x's 2 TensorCores; 2 MiB tiles keep the 2-deep
    # pipeline (in + out double-buffered = 8 MiB) within v5e's 16 MiB default
    # scoped VMEM while still large enough to sit near the HBM roofline.
    rows, cols = x2d.shape
    total = rows * cols
    spec = pl.BlockSpec((_BLOCK_ROWS, cols), lambda i: (i, 0))
    return pl.pallas_call(
        relu_kernel,
        out_shape=jax.ShapeDtypeStruct(x2d.shape, x2d.dtype),
        grid=(rows // _BLOCK_ROWS,),
        in_specs=[spec],
        out_specs=spec,
        input_output_aliases={0: 0},
        cost_estimate=_cost(total, x2d.dtype.itemsize),
        compiler_params=pltpu.CompilerParams(
            dimension_semantics=("parallel",)),
    )(x2d)


@functools.partial(jax.jit, donate_argnums=(0,))
def relu_pallas(x):
    """ReLU with inplace semantics: input is donated / aliased to the output."""
    orig_shape = x.shape
    total = x.size
    nbytes = total * x.dtype.itemsize

    if (nbytes >= _TILED_THRESHOLD_BYTES
            and total % (_BLOCK_ROWS * _LANES) == 0):
        y2d = _relu_tiled(x.reshape(total // _LANES, _LANES))
    else:
        # Lane-dense slab: keep the sublane dim at exactly 8 when possible.
        if total % 8 == 0:
            x2d = x.reshape(8, total // 8)
        else:
            x2d = x.reshape(1, total)
        y2d = _relu_small(x2d)

    return y2d.reshape(orig_shape)


if __name__ == "__main__":
    key = jax.random.PRNGKey(0)

    # Module spec input: x84 = torch.randn([1, 64, 25, 25])
    x = jax.random.normal(key, (1, 64, 25, 25), dtype=jnp.float32)

    # Reference computed (eagerly) BEFORE the kernel call: x is donated.
    y_ref = jnp.maximum(x, 0.0)
    jax.block_until_ready(y_ref)
    x_shape, x_dtype = x.shape, x.dtype

    y = relu_pallas(x)
    jax.block_until_ready(y)

    assert y.shape == x_shape and y.dtype == x_dtype
    # ReLU is bit-exact -> strict equality check.
    assert jnp.array_equal(y_ref, y), "mismatch vs reference ReLU (small path)"

    # Also exercise the large-activation (tiled, "parallel"-grid) template.
    xl = jax.random.normal(jax.random.PRNGKey(1), (512, 4096), dtype=jnp.float32)
    yl_ref = jnp.maximum(xl, 0.0)
    jax.block_until_ready(yl_ref)
    yl = relu_pallas(xl)
    jax.block_until_ready(yl)
    assert jnp.array_equal(yl_ref, yl), "mismatch vs reference ReLU (tiled path)"

    print("KERNEL_OK")
</pallas_src>

<mosaic_0001>
module attributes {stable_mosaic.version = 11 : i64} {
  func.func @relu_kernel(%arg0: memref<8x5000xf32, #tpu.memory_space<vmem>>, %arg1: memref<8x5000xf32, #tpu.memory_space<vmem>>) attributes {dimension_semantics = [], scalar_prefetch = 0 : i64, scratch_operands = 0 : i64, tpu.core_type = #tpu.core_type<tc>} {
    %c0 = arith.constant 0 : index
    %c0_0 = arith.constant 0 : index
    %0 = vector.load %arg0[%c0, %c0_0] : memref<8x5000xf32, #tpu.memory_space<vmem>>, vector<8x5000xf32>
    %cst = arith.constant 0.000000e+00 : f32
    %1 = vector.broadcast %cst : f32 to vector<8x5000xf32>
    %2 = arith.maximumf %0, %1 : vector<8x5000xf32>
    %c0_1 = arith.constant 0 : index
    %c0_2 = arith.constant 0 : index
    %3 = vector.load %arg1[%c0_1, %c0_2] : memref<8x5000xf32, #tpu.memory_space<vmem>>, vector<8x5000xf32>
    tpu.vector_store %arg1[%c0_1, %c0_2], %2 {strides = array<i32>} : memref<8x5000xf32, #tpu.memory_space<vmem>>, vector<8x5000xf32>,
    return
  }
}

</mosaic_0001>

<bundles_post_ra>
// kernel: relu_pallas.1
= control target key start
LH: loop header
LB: loop body
LE: loop exit
PB: predicated region body
PF: predicated region fallthrough
CT: control target
= control target key end

     0   :  { %vm127_vm0 = vcmask 64512   ;;  %s383_s0 = inlined_call_operand.vmem [shape: f32[8,5000], index: 0, kind: input, shape index: {}, may-alias: {0,1}]   ;;  %s384_s1 = inlined_call_operand.vmem [shape: f32[8,5000], index: 1, kind: output, shape index: {}, may-alias: {0,1}]  }
   0x1   :  { %v8_v0 = vld [vmem:[%s383_s0] sm:$0xff]  ;;  %v9_v1 = vld [vmem:[%s383_s0 + $0x8] sm:$0xff]  ;;  %v10_v2 = vld [vmem:[%s383_s0 + $0x10] sm:$0xff] }
   0x2   :  { %v48_v3 = vmax.f32 %v8_v0, 0.0  ;;  %v49_v4 = vmax.f32 %v9_v1, 0.0  ;;  %v50_v5 = vmax.f32 %v10_v2, 0.0  ;;  %v11_v6 = vld [vmem:[%s383_s0 + $0x18] sm:$0xff]  ;;  %v12_v7 = vld [vmem:[%s383_s0 + $0x20] sm:$0xff]  ;;  %v13_v8 = vld [vmem:[%s383_s0 + $0x28] sm:$0xff] }
   0x3   :  { %v51_v9 = vmax.f32 %v11_v6, 0.0  ;;  %v52_v10 = vmax.f32 %v12_v7, 0.0  ;;  %v53_v11 = vmax.f32 %v13_v8, 0.0  ;;  %v14_v12 = vld [vmem:[%s383_s0 + $0x30] sm:$0xff]  ;;  %v15_v13 = vld [vmem:[%s383_s0 + $0x38] sm:$0xff]  ;;  %v16_v14 = vld [vmem:[%s383_s0 + $0x40] sm:$0xff] }
   0x4   :  { %88 = vst [vmem:[%s384_s1] sm:$0xff] %v48_v3  ;;  %89 = vst [vmem:[%s384_s1 + $0x8] sm:$0xff] %v49_v4  ;;  %v54_v15 = vmax.f32 %v14_v12, 0.0  ;;  %v55_v16 = vmax.f32 %v15_v13, 0.0  ;;  %v56_v17 = vmax.f32 %v16_v14, 0.0 }
   0x5   :  { %90 = vst [vmem:[%s384_s1 + $0x10] sm:$0xff] %v50_v5 }
   0xc   :  { %v17_v18 = vld [vmem:[%s383_s0 + $0x48] sm:$0xff]  ;;  %v18_v19 = vld [vmem:[%s383_s0 + $0x50] sm:$0xff]  ;;  %v19_v20 = vld [vmem:[%s383_s0 + $0x58] sm:$0xff] }
   0xd   :  { %91 = vst [vmem:[%s384_s1 + $0x18] sm:$0xff] %v51_v9  ;;  %92 = vst [vmem:[%s384_s1 + $0x20] sm:$0xff] %v52_v10  ;;  %v57_v21 = vmax.f32 %v17_v18, 0.0  ;;  %v58_v22 = vmax.f32 %v18_v19, 0.0  ;;  %v59_v23 = vmax.f32 %v19_v20, 0.0 }
   0xe   :  { %93 = vst [vmem:[%s384_s1 + $0x28] sm:$0xff] %v53_v11 }
  0x15   :  { %v20_v24 = vld [vmem:[%s383_s0 + $0x60] sm:$0xff]  ;;  %v21_v25 = vld [vmem:[%s383_s0 + $0x68] sm:$0xff]  ;;  %v22_v26 = vld [vmem:[%s383_s0 + $0x70] sm:$0xff] }
  0x16   :  { %94 = vst [vmem:[%s384_s1 + $0x30] sm:$0xff] %v54_v15  ;;  %95 = vst [vmem:[%s384_s1 + $0x38] sm:$0xff] %v55_v16  ;;  %v60_v27 = vmax.f32 %v20_v24, 0.0  ;;  %v61_v28 = vmax.f32 %v21_v25, 0.0  ;;  %v62_v29 = vmax.f32 %v22_v26, 0.0 }
  0x17   :  { %96 = vst [vmem:[%s384_s1 + $0x40] sm:$0xff] %v56_v17 }
  0x1e   :  { %v23_v30 = vld [vmem:[%s383_s0 + $0x78] sm:$0xff]  ;;  %v24_v31 = vld [vmem:[%s383_s0 + $0x80] sm:$0xff]  ;;  %v25_v32 = vld [vmem:[%s383_s0 + $0x88] sm:$0xff] }
  0x1f   :  { %97 = vst [vmem:[%s384_s1 + $0x48] sm:$0xff] %v57_v21  ;;  %98 = vst [vmem:[%s384_s1 + $0x50] sm:$0xff] %v58_v22  ;;  %v63_v33 = vmax.f32 %v23_v30, 0.0  ;;  %v64_v34 = vmax.f32 %v24_v31, 0.0  ;;  %v65_v35 = vmax.f32 %v25_v32, 0.0 }
  0x20   :  { %99 = vst [vmem:[%s384_s1 + $0x58] sm:$0xff] %v59_v23 }
  0x27   :  { %v26_v36 = vld [vmem:[%s383_s0 + $0x90] sm:$0xff]  ;;  %v27_v37 = vld [vmem:[%s383_s0 + $0x98] sm:$0xff]  ;;  %v28_v38 = vld [vmem:[%s383_s0 + $0xa0] sm:$0xff] }
  0x28   :  { %100 = vst [vmem:[%s384_s1 + $0x60] sm:$0xff] %v60_v27  ;;  %101 = vst [vmem:[%s384_s1 + $0x68] sm:$0xff] %v61_v28  ;;  %v66_v39 = vmax.f32 %v26_v36, 0.0  ;;  %v67_v40 = vmax.f32 %v27_v37, 0.0  ;;  %v68_v41 = vmax.f32 %v28_v38, 0.0 }
  0x29   :  { %102 = vst [vmem:[%s384_s1 + $0x70] sm:$0xff] %v62_v29 }
  0x30   :  { %v29_v42 = vld [vmem:[%s383_s0 + $0xa8] sm:$0xff]  ;;  %v30_v43 = vld [vmem:[%s383_s0 + $0xb0] sm:$0xff]  ;;  %v31_v44 = vld [vmem:[%s383_s0 + $0xb8] sm:$0xff] }
  0x31   :  { %103 = vst [vmem:[%s384_s1 + $0x78] sm:$0xff] %v63_v33  ;;  %104 = vst [vmem:[%s384_s1 + $0x80] sm:$0xff] %v64_v34  ;;  %v69_v45 = vmax.f32 %v29_v42, 0.0  ;;  %v70_v46 = vmax.f32 %v30_v43, 0.0  ;;  %v71_v47 = vmax.f32 %v31_v44, 0.0 }
  0x32   :  { %105 = vst [vmem:[%s384_s1 + $0x88] sm:$0xff] %v65_v35 }
  0x39   :  { %v32_v48 = vld [vmem:[%s383_s0 + $0xc0] sm:$0xff]  ;;  %v33_v49 = vld [vmem:[%s383_s0 + $0xc8] sm:$0xff]  ;;  %v34_v50 = vld [vmem:[%s383_s0 + $0xd0] sm:$0xff] }
  0x3a   :  { %106 = vst [vmem:[%s384_s1 + $0x90] sm:$0xff] %v66_v39  ;;  %107 = vst [vmem:[%s384_s1 + $0x98] sm:$0xff] %v67_v40  ;;  %v72_v51 = vmax.f32 %v32_v48, 0.0  ;;  %v73_v52 = vmax.f32 %v33_v49, 0.0  ;;  %v74_v53 = vmax.f32 %v34_v50, 0.0 }
  0x3b   :  { %108 = vst [vmem:[%s384_s1 + $0xa0] sm:$0xff] %v68_v41 }
  0x42   :  { %v35_v54 = vld [vmem:[%s383_s0 + $0xd8] sm:$0xff]  ;;  %v36_v55 = vld [vmem:[%s383_s0 + $0xe0] sm:$0xff]  ;;  %v37_v56 = vld [vmem:[%s383_s0 + $0xe8] sm:$0xff] }
  0x43   :  { %109 = vst [vmem:[%s384_s1 + $0xa8] sm:$0xff] %v69_v45  ;;  %110 = vst [vmem:[%s384_s1 + $0xb0] sm:$0xff] %v70_v46  ;;  %v75_v57 = vmax.f32 %v35_v54, 0.0  ;;  %v76_v58 = vmax.f32 %v36_v55, 0.0  ;;  %v77_v59 = vmax.f32 %v37_v56, 0.0 }
  0x44   :  { %111 = vst [vmem:[%s384_s1 + $0xb8] sm:$0xff] %v71_v47 }
  0x4b   :  { %v38_v60 = vld [vmem:[%s383_s0 + $0xf0] sm:$0xff]  ;;  %v39_v61 = vld [vmem:[%s383_s0 + $0xf8] sm:$0xff]  ;;  %v40_v62 = vld [vmem:[%s383_s0 + $0x100] sm:$0xff] }
  0x4c   :  { %112 = vst [vmem:[%s384_s1 + $0xc0] sm:$0xff] %v72_v51  ;;  %113 = vst [vmem:[%s384_s1 + $0xc8] sm:$0xff] %v73_v52  ;;  %v78_v63 = vmax.f32 %v38_v60, 0.0  ;;  %v79_v0 = vmax.f32 %v39_v61, 0.0  ;;  %v80_v1 = vmax.f32 %v40_v62, 0.0 }
  0x4d   :  { %114 = vst [vmem:[%s384_s1 + $0xd0] sm:$0xff] %v74_v53 }
  0x54   :  { %v41_v2 = vld [vmem:[%s383_s0 + $0x108] sm:$0xff]  ;;  %v42_v3 = vld [vmem:[%s383_s0 + $0x110] sm:$0xff]  ;;  %v43_v4 = vld [vmem:[%s383_s0 + $0x118] sm:$0xff] }
  0x55   :  { %115 = vst [vmem:[%s384_s1 + $0xd8] sm:$0xff] %v75_v57  ;;  %116 = vst [vmem:[%s384_s1 + $0xe0] sm:$0xff] %v76_v58  ;;  %v81_v5 = vmax.f32 %v41_v2, 0.0  ;;  %v82_v6 = vmax.f32 %v42_v3, 0.0  ;;  %v83_v7 = vmax.f32 %v43_v4, 0.0 }
  0x56   :  { %117 = vst [vmem:[%s384_s1 + $0xe8] sm:$0xff] %v77_v59 }
  0x5d   :  { %v44_v8 = vld [vmem:[%s383_s0 + $0x120] sm:$0xff]  ;;  %v45_v9 = vld [vmem:[%s383_s0 + $0x128] sm:$0xff]  ;;  %v46_v10 = vld [vmem:[%s383_s0 + $0x130] sm:$0xff] }
  0x5e   :  { %118 = vst [vmem:[%s384_s1 + $0xf0] sm:$0xff] %v78_v63  ;;  %119 = vst [vmem:[%s384_s1 + $0xf8] sm:$0xff] %v79_v0  ;;  %v84_v11 = vmax.f32 %v44_v8, 0.0  ;;  %v85_v12 = vmax.f32 %v45_v9, 0.0  ;;  %v86_v13 = vmax.f32 %v46_v10, 0.0 }
  0x5f   :  { %120 = vst [vmem:[%s384_s1 + $0x100] sm:$0xff] %v80_v1 }
  0x66   :  { %v47_v14 = vld [vmem:[%s383_s0 + $0x138] sm:$0xff] }
  0x67   :  { %121 = vst [vmem:[%s384_s1 + $0x108] sm:$0xff] %v81_v5  ;;  %122 = vst [vmem:[%s384_s1 + $0x110] sm:$0xff] %v82_v6  ;;  %v87_v15 = vmax.f32 %v47_v14, 0.0 }
  0x68   :  { %123 = vst [vmem:[%s384_s1 + $0x118] sm:$0xff] %v83_v7  ;;  %124 = vst [vmem:[%s384_s1 + $0x120] sm:$0xff] %v84_v11 }
  0x69   :  { %125 = vst [vmem:[%s384_s1 + $0x128] sm:$0xff] %v85_v12  ;;  %126 = vst [vmem:[%s384_s1 + $0x130] sm:$0xff] %v86_v13 }
  0x6a   :  { %128 = vst.msk [vmem:[%s384_s1 + $0x138] sm:$0xff] %vm127_vm0, %v87_v15 }

</bundles_post_ra>
